<compile_context>
chip_gen: v7x
topology: tpu7x:2x2x1
jax: 0.10.0
libtpu: 0.0.40
codegen_flags: <defaults>
</compile_context>

<pallas_src>
import jax
import jax.numpy as jnp
from jax import lax
from jax.experimental import pallas as pl
from jax.experimental.pallas import tpu as pltpu

LANES = 128
SUBLANES = 8
TILE_ROWS = 16384            # rows per DMA block: (16384, 128) f32 = 8 MiB
CHUNK_ROWS = 1024            # rows per in-kernel compute chunk (bounds VMEM temps)
NSPLIT = 2                   # leading "parallel" axis on multi-TC devices
VMEM_LIMIT_BYTES = 48 * 1024 * 1024


def _tensorcores_per_device():
    """Best-effort count of TensorCores behind one JAX device (megacore-style)."""
    try:
        kind = jax.devices()[0].device_kind.lower()
    except Exception:
        return 1
    return 2 if any(tag in kind for tag in ("v4", "v5p", "v7", "7x")) else 1


def _make_kernel(chunk):
    """Builds the kernel for a given (static) per-chunk row count."""

    def kernel(scal_ref, pred_ref, tgt_ref, acc_ref):
        # scal_ref (SMEM): [0] real row count, [1] last real block index,
        #                  [2] number of fully-populated blocks.
        c = pl.program_id(0)                  # split axis ("parallel")
        k = pl.program_id(1)                  # reduction axis ("arbitrary")
        steps_per_split = pl.num_programs(1)
        tile_rows = pred_ref.shape[0]
        num_chunks = tile_rows // chunk
        sub = chunk // SUBLANES

        @pl.when(k == 0)
        def _init():
            acc_ref[...] = jnp.zeros_like(acc_ref)

        raw_block = c * steps_per_split + k

        def accum_chunk(i, extra_mask):
            r0 = pl.multiple_of(i * chunk, SUBLANES)
            # In-kernel cast: HBM / VMEM traffic stays at the input's width.
            t = tgt_ref[pl.ds(r0, chunk), :].astype(jnp.float32)
            p = pred_ref[pl.ds(r0, chunk), :].astype(jnp.float32)
            valid = extra_mask(t > 0.0, r0)
            # where() so NaN/Inf at masked-out positions never propagate
            # (torch boolean indexing drops those entries entirely).
            d = jnp.where(valid, t - p, 0.0)
            # (8,128)-shaped partial sums: pure VPU adds into the resident
            # accumulator; no per-step cross-lane reduction.
            acc_ref[0, 0] += jnp.sum((d * d).reshape(sub, SUBLANES, LANES), axis=0)
            acc_ref[0, 1] += jnp.sum(jnp.abs(d).reshape(sub, SUBLANES, LANES), axis=0)
            acc_ref[0, 2] += jnp.sum(
                valid.astype(jnp.float32).reshape(sub, SUBLANES, LANES), axis=0)

        interior = raw_block < scal_ref[2]

        # Fast path: fully-populated block, only the data mask is needed.
        @pl.when(interior)
        def _interior():
            def body(i, carry):
                accum_chunk(i, lambda v, r0: v)
                return carry
            lax.fori_loop(0, num_chunks, body, 0)

        # Boundary path: partial trailing block, or a surplus step of a split
        # whose index_map was clamped (its rows land past `rows` and must
        # contribute nothing).
        @pl.when(jnp.logical_not(interior))
        def _boundary():
            num_rows = scal_ref[0]
            base_row = raw_block * tile_rows

            def body(i, carry):
                def mask(v, r0):
                    row_id = (base_row + r0 +
                              lax.broadcasted_iota(jnp.int32, (chunk, 1), 0))
                    return jnp.logical_and(v, row_id < num_rows)
                accum_chunk(i, mask)
                return carry
            lax.fori_loop(0, num_chunks, body, 0)

    return kernel


def masked_both_loss(pred, target, weight=None, *, tile_rows_hint=None):
    """Computes 0.5 * masked-MSE + 0.5 * masked-L1 over the target > 0 entries."""
    del weight  # unused by the original PyTorch forward as well
    assert pred.ndim == target.ndim, "inconsistent dimensions"
    assert pred.shape == target.shape

    p = pred.reshape(-1)
    t = target.reshape(-1)
    n = p.shape[0]

    vreg_elems = SUBLANES * LANES                    # 1024
    n_main = (n // vreg_elems) * vreg_elems          # kernel-covered prefix
    rem = n - n_main                                 # ragged tail (< 1024)

    sums = jnp.zeros((3,), jnp.float32)              # [sum d^2, sum |d|, count]

    if n_main > 0:
        rows = n_main // LANES                       # multiple of 8
        # No jnp.pad of the whole array: pure (free) reshape when rem == 0;
        # only ragged inputs slice the 1024-aligned prefix.
        # TODO(synk): a 1-D element-masked variant would also remove the
        # residual prefix slice for ragged n.
        pm = p if rem == 0 else p[:n_main]
        tm = t if rem == 0 else t[:n_main]
        p2 = pm.reshape(rows, LANES)
        t2 = tm.reshape(rows, LANES)

        if tile_rows_hint is not None:
            tile_rows = min(int(tile_rows_hint), rows)
        elif rows >= CHUNK_ROWS:
            tile_rows = min(TILE_ROWS, (rows // CHUNK_ROWS) * CHUNK_ROWS)
        else:
            tile_rows = rows
        chunk = tile_rows if tile_rows <= CHUNK_ROWS else CHUNK_ROWS
        assert tile_rows % SUBLANES == 0 and tile_rows % chunk == 0

        total_blocks = pl.cdiv(rows, tile_rows)
        nsplit = NSPLIT if (total_blocks >= NSPLIT
                            and _tensorcores_per_device() >= NSPLIT) else 1
        steps_per_split = pl.cdiv(total_blocks, nsplit)
        num_full_blocks = rows // tile_rows

        # Scalar prefetch (SMEM): [rows, last real block idx, #full blocks].
        scalars = jnp.array([rows, total_blocks - 1, num_full_blocks],
                            dtype=jnp.int32)

        def data_map(c, k, s):
            # Clamp so the DMA window always addresses a real block; surplus
            # steps re-read the last block but are fully masked in the kernel.
            return (jnp.minimum(c * steps_per_split + k, s[1]), 0)

        def acc_map(c, k, s):
            return (c, 0, 0, 0)

        acc = pl.pallas_call(
            _make_kernel(chunk),
            out_shape=jax.ShapeDtypeStruct((nsplit, 3, SUBLANES, LANES),
                                           jnp.float32),
            grid_spec=pltpu.PrefetchScalarGridSpec(
                num_scalar_prefetch=1,
                grid=(nsplit, steps_per_split),
                in_specs=[
                    pl.BlockSpec((tile_rows, LANES), data_map),
                    pl.BlockSpec((tile_rows, LANES), data_map),
                ],
                out_specs=pl.BlockSpec((1, 3, SUBLANES, LANES), acc_map),
            ),
            compiler_params=pltpu.CompilerParams(
                dimension_semantics=("parallel", "arbitrary"),
                vmem_limit_bytes=VMEM_LIMIT_BYTES),
        )(scalars, p2, t2)

        sums = sums + jnp.sum(acc, axis=(0, 2, 3))

    if rem > 0:
        # Tiny (<1024-element) ragged tail: plain jnp, negligible HBM traffic.
        tt = t[n_main:].astype(jnp.float32)
        pt = p[n_main:].astype(jnp.float32)
        m = tt > 0.0
        d = jnp.where(m, tt - pt, 0.0)
        sums = sums + jnp.stack([jnp.sum(d * d), jnp.sum(jnp.abs(d)),
                                 jnp.sum(m.astype(jnp.float32))])

    # 0/0 -> NaN, matching torch's mean() over an empty selection.
    return 0.5 * (sums[0] + sums[1]) / sums[2]


def _reference(pred, target):
    mask = target > 0
    diff = jnp.where(mask, (target - pred).astype(jnp.float32), 0.0)
    cnt = jnp.sum(mask)
    return 0.5 * (jnp.sum(diff * diff) + jnp.sum(jnp.abs(diff))) / cnt


if __name__ == "__main__":
    key = jax.random.PRNGKey(0)
    k1, k2, k3, k4, k5, k6 = jax.random.split(key, 6)

    # Primary check: NCHW depth-style pred/target maps (n = 2048 -> fully
    # copy-free path: pure reshape, single block).
    shape = (2, 4, 16, 16)
    pred = jax.random.normal(k1, shape, dtype=jnp.float32)
    target = jax.random.normal(k2, shape, dtype=jnp.float32)
    loss = jax.jit(masked_both_loss)(pred, target)
    jax.block_until_ready(loss)
    assert jnp.allclose(loss, _reference(pred, target), rtol=1e-5, atol=1e-6), (
        loss, _reference(pred, target))

    # Partial trailing block + NaNs in masked-out predictions (forces the
    # boundary path: rows=24 with a 16-row tile).
    shape2 = (2, 3, 512)
    pred2 = jax.random.normal(k3, shape2, dtype=jnp.float32)
    target2 = jax.random.normal(k4, shape2, dtype=jnp.float32)
    pred2 = jnp.where(target2 <= 0, jnp.nan, pred2)
    loss2 = masked_both_loss(pred2, target2, tile_rows_hint=16)
    jax.block_until_ready(loss2)
    assert jnp.allclose(loss2, _reference(pred2, target2), rtol=1e-5, atol=1e-6), (
        loss2, _reference(pred2, target2))

    # Ragged size (n % 1024 != 0): kernel over the 1024-element prefix,
    # <1024-element tail folded in with plain jnp (no whole-array pad).
    shape3 = (3, 11, 37)
    pred3 = jax.random.normal(k5, shape3, dtype=jnp.float32)
    target3 = jax.random.normal(k6, shape3, dtype=jnp.float32)
    loss3 = masked_both_loss(pred3, target3)
    jax.block_until_ready(loss3)
    assert jnp.allclose(loss3, _reference(pred3, target3), rtol=1e-5, atol=1e-6), (
        loss3, _reference(pred3, target3))

    print("KERNEL_OK")
</pallas_src>

<mosaic_0001>
module attributes {stable_mosaic.version = 11 : i64} {
  func.func @kernel(%arg0: i32, %arg1: i32, %arg2: memref<3xi32, #tpu.memory_space<smem>>, %arg3: memref<16x128xf32, #tpu.memory_space<vmem>>, %arg4: memref<16x128xf32, #tpu.memory_space<vmem>>, %arg5: memref<1x3x8x128xf32, #tpu.memory_space<vmem>>) attributes {dimension_semantics = [#tpu.dimension_semantics<parallel>, #tpu.dimension_semantics<arbitrary>], iteration_bounds = array<i64: 1, 1>, scalar_prefetch = 1 : i64, scratch_operands = 0 : i64, tpu.core_type = #tpu.core_type<tc>, window_params = [{transform_indices = @transform_0, window_bounds = array<i64: 16, 128>}, {transform_indices = @transform_1, window_bounds = array<i64: 16, 128>}, {transform_indices = @transform_2, window_bounds = array<i64: 1, 3, 8, 128>}]} {
    %c0_i32 = arith.constant 0 : i32
    %0 = arith.cmpi eq, %arg1, %c0_i32 : i32
    %1 = arith.extui %0 : i1 to i32
    %c0_i32_0 = arith.constant 0 : i32
    %2 = arith.cmpi ne, %1, %c0_i32_0 : i32
    scf.if %2 {
      %cst = arith.constant 0.000000e+00 : f32
      %12 = vector.broadcast %cst : f32 to vector<1x3x8x128xf32>
      %c0 = arith.constant 0 : index
      %c0_3 = arith.constant 0 : index
      %c0_4 = arith.constant 0 : index
      %c0_5 = arith.constant 0 : index
      %13 = vector.load %arg5[%c0, %c0_3, %c0_4, %c0_5] : memref<1x3x8x128xf32, #tpu.memory_space<vmem>>, vector<1x3x8x128xf32>
      tpu.vector_store %arg5[%c0, %c0_3, %c0_4, %c0_5], %12 {strides = array<i32>} : memref<1x3x8x128xf32, #tpu.memory_space<vmem>>, vector<1x3x8x128xf32>,
    } else {
    }
    %c1_i32 = arith.constant 1 : i32
    %3 = arith.muli %arg0, %c1_i32 : i32
    %4 = arith.addi %3, %arg1 : i32
    %c2 = arith.constant 2 : index
    %5 = memref.load %arg2[%c2] : memref<3xi32, #tpu.memory_space<smem>>
    %6 = arith.cmpi slt, %4, %5 : i32
    %7 = arith.extui %6 : i1 to i32
    %c0_i32_1 = arith.constant 0 : i32
    %8 = arith.cmpi ne, %7, %c0_i32_1 : i32
    scf.if %8 {
      %c0_i32_3 = arith.constant 0 : i32
      %c16_i32 = arith.constant 16 : i32
      %12 = arith.muli %c0_i32_3, %c16_i32 : i32
      %13 = tpu.assume_multiple %12, 8 : i32
      %14 = arith.index_cast %13 : i32 to index
      %c0 = arith.constant 0 : index
      %15 = vector.load %arg4[%14, %c0] : memref<16x128xf32, #tpu.memory_space<vmem>>, vector<16x128xf32>
      %16 = arith.index_cast %13 : i32 to index
      %c0_4 = arith.constant 0 : index
      %17 = vector.load %arg3[%16, %c0_4] : memref<16x128xf32, #tpu.memory_space<vmem>>, vector<16x128xf32>
      %cst = arith.constant 0.000000e+00 : f32
      %18 = vector.broadcast %cst : f32 to vector<16x128xf32>
      %19 = arith.cmpf ogt, %15, %18 : vector<16x128xf32>
      %20 = arith.subf %15, %17 : vector<16x128xf32>
      %cst_5 = arith.constant 0.000000e+00 : f32
      %21 = vector.broadcast %cst_5 : f32 to vector<16x128xf32>
      %22 = arith.select %19, %20, %21 : vector<16x128xi1>, vector<16x128xf32>
      %c0_6 = arith.constant 0 : index
      %c0_7 = arith.constant 0 : index
      %c0_8 = arith.constant 0 : index
      %c0_9 = arith.constant 0 : index
      %23 = vector.load %arg5[%c0_6, %c0_7, %c0_8, %c0_9] : memref<1x3x8x128xf32, #tpu.memory_space<vmem>>, vector<1x1x8x128xf32>
      %24 = vector.shape_cast %23 : vector<1x1x8x128xf32> to vector<8x128xf32>
      %25 = arith.mulf %22, %22 : vector<16x128xf32>
      %26 = vector.shape_cast %25 : vector<16x128xf32> to vector<2x8x128xf32>
      %cst_10 = arith.constant dense<0.000000e+00> : vector<8x128xf32>
      %27 = vector.multi_reduction <add>, %26, %cst_10 [0] : vector<2x8x128xf32> to vector<8x128xf32>
      %28 = arith.addf %24, %27 : vector<8x128xf32>
      %c0_11 = arith.constant 0 : index
      %c0_12 = arith.constant 0 : index
      %c0_13 = arith.constant 0 : index
      %c0_14 = arith.constant 0 : index
      %29 = vector.load %arg5[%c0_11, %c0_12, %c0_13, %c0_14] : memref<1x3x8x128xf32, #tpu.memory_space<vmem>>, vector<1x1x8x128xf32>
      %30 = vector.shape_cast %29 : vector<1x1x8x128xf32> to vector<8x128xf32>
      %31 = vector.shape_cast %28 : vector<8x128xf32> to vector<1x1x8x128xf32>
      tpu.vector_store %arg5[%c0_11, %c0_12, %c0_13, %c0_14], %31 {strides = array<i32>} : memref<1x3x8x128xf32, #tpu.memory_space<vmem>>, vector<1x1x8x128xf32>,
      %c0_15 = arith.constant 0 : index
      %c1 = arith.constant 1 : index
      %c0_16 = arith.constant 0 : index
      %c0_17 = arith.constant 0 : index
      %32 = vector.load %arg5[%c0_15, %c1, %c0_16, %c0_17] : memref<1x3x8x128xf32, #tpu.memory_space<vmem>>, vector<1x1x8x128xf32>
      %33 = vector.shape_cast %32 : vector<1x1x8x128xf32> to vector<8x128xf32>
      %34 = math.absf %22 : vector<16x128xf32>
      %35 = vector.shape_cast %34 : vector<16x128xf32> to vector<2x8x128xf32>
      %cst_18 = arith.constant dense<0.000000e+00> : vector<8x128xf32>
      %36 = vector.multi_reduction <add>, %35, %cst_18 [0] : vector<2x8x128xf32> to vector<8x128xf32>
      %37 = arith.addf %33, %36 : vector<8x128xf32>
      %c0_19 = arith.constant 0 : index
      %c1_20 = arith.constant 1 : index
      %c0_21 = arith.constant 0 : index
      %c0_22 = arith.constant 0 : index
      %38 = vector.load %arg5[%c0_19, %c1_20, %c0_21, %c0_22] : memref<1x3x8x128xf32, #tpu.memory_space<vmem>>, vector<1x1x8x128xf32>
      %39 = vector.shape_cast %38 : vector<1x1x8x128xf32> to vector<8x128xf32>
      %40 = vector.shape_cast %37 : vector<8x128xf32> to vector<1x1x8x128xf32>
      tpu.vector_store %arg5[%c0_19, %c1_20, %c0_21, %c0_22], %40 {strides = array<i32>} : memref<1x3x8x128xf32, #tpu.memory_space<vmem>>, vector<1x1x8x128xf32>,
      %c0_23 = arith.constant 0 : index
      %c2_24 = arith.constant 2 : index
      %c0_25 = arith.constant 0 : index
      %c0_26 = arith.constant 0 : index
      %41 = vector.load %arg5[%c0_23, %c2_24, %c0_25, %c0_26] : memref<1x3x8x128xf32, #tpu.memory_space<vmem>>, vector<1x1x8x128xf32>
      %42 = vector.shape_cast %41 : vector<1x1x8x128xf32> to vector<8x128xf32>
      %43 = arith.extui %19 : vector<16x128xi1> to vector<16x128xi32>
      %44 = arith.sitofp %43 : vector<16x128xi32> to vector<16x128xf32>
      %45 = vector.shape_cast %44 : vector<16x128xf32> to vector<2x8x128xf32>
      %cst_27 = arith.constant dense<0.000000e+00> : vector<8x128xf32>
      %46 = vector.multi_reduction <add>, %45, %cst_27 [0] : vector<2x8x128xf32> to vector<8x128xf32>
      %47 = arith.addf %42, %46 : vector<8x128xf32>
      %c0_28 = arith.constant 0 : index
      %c2_29 = arith.constant 2 : index
      %c0_30 = arith.constant 0 : index
      %c0_31 = arith.constant 0 : index
      %48 = vector.load %arg5[%c0_28, %c2_29, %c0_30, %c0_31] : memref<1x3x8x128xf32, #tpu.memory_space<vmem>>, vector<1x1x8x128xf32>
      %49 = vector.shape_cast %48 : vector<1x1x8x128xf32> to vector<8x128xf32>
      %50 = vector.shape_cast %47 : vector<8x128xf32> to vector<1x1x8x128xf32>
      tpu.vector_store %arg5[%c0_28, %c2_29, %c0_30, %c0_31], %50 {strides = array<i32>} : memref<1x3x8x128xf32, #tpu.memory_space<vmem>>, vector<1x1x8x128xf32>,
      %c1_i32_32 = arith.constant 1 : i32
    } else {
    }
    %true = arith.constant true
    %9 = arith.xori %6, %true : i1
    %10 = arith.extui %9 : i1 to i32
    %c0_i32_2 = arith.constant 0 : i32
    %11 = arith.cmpi ne, %10, %c0_i32_2 : i32
    scf.if %11 {
      %c0 = arith.constant 0 : index
      %12 = memref.load %arg2[%c0] : memref<3xi32, #tpu.memory_space<smem>>
      %c16_i32 = arith.constant 16 : i32
      %13 = arith.muli %4, %c16_i32 : i32
      %c0_i32_3 = arith.constant 0 : i32
      %c16_i32_4 = arith.constant 16 : i32
      %14 = arith.muli %c0_i32_3, %c16_i32_4 : i32
      %15 = tpu.assume_multiple %14, 8 : i32
      %16 = arith.index_cast %15 : i32 to index
      %c0_5 = arith.constant 0 : index
      %17 = vector.load %arg4[%16, %c0_5] : memref<16x128xf32, #tpu.memory_space<vmem>>, vector<16x128xf32>
      %18 = arith.index_cast %15 : i32 to index
      %c0_6 = arith.constant 0 : index
      %19 = vector.load %arg3[%18, %c0_6] : memref<16x128xf32, #tpu.memory_space<vmem>>, vector<16x128xf32>
      %cst = arith.constant 0.000000e+00 : f32
      %20 = vector.broadcast %cst : f32 to vector<16x128xf32>
      %21 = arith.cmpf ogt, %17, %20 : vector<16x128xf32>
      %22 = arith.addi %13, %15 : i32
      %23 = tpu.iota {dimensions = array<i32: 0>} : vector<16x1xi32>
      %24 = vector.broadcast %22 : i32 to vector<16x1xi32>
      %25 = arith.addi %24, %23 : vector<16x1xi32>
      %26 = vector.broadcast %12 : i32 to vector<16x1xi32>
      %27 = arith.cmpi slt, %25, %26 : vector<16x1xi32>
      %28 = vector.broadcast %27 : vector<16x1xi1> to vector<16x128xi1>
      %29 = arith.andi %21, %28 : vector<16x128xi1>
      %30 = arith.subf %17, %19 : vector<16x128xf32>
      %cst_7 = arith.constant 0.000000e+00 : f32
      %31 = vector.broadcast %cst_7 : f32 to vector<16x128xf32>
      %32 = arith.select %29, %30, %31 : vector<16x128xi1>, vector<16x128xf32>
      %c0_8 = arith.constant 0 : index
      %c0_9 = arith.constant 0 : index
      %c0_10 = arith.constant 0 : index
      %c0_11 = arith.constant 0 : index
      %33 = vector.load %arg5[%c0_8, %c0_9, %c0_10, %c0_11] : memref<1x3x8x128xf32, #tpu.memory_space<vmem>>, vector<1x1x8x128xf32>
      %34 = vector.shape_cast %33 : vector<1x1x8x128xf32> to vector<8x128xf32>
      %35 = arith.mulf %32, %32 : vector<16x128xf32>
      %36 = vector.shape_cast %35 : vector<16x128xf32> to vector<2x8x128xf32>
      %cst_12 = arith.constant dense<0.000000e+00> : vector<8x128xf32>
      %37 = vector.multi_reduction <add>, %36, %cst_12 [0] : vector<2x8x128xf32> to vector<8x128xf32>
      %38 = arith.addf %34, %37 : vector<8x128xf32>
      %c0_13 = arith.constant 0 : index
      %c0_14 = arith.constant 0 : index
      %c0_15 = arith.constant 0 : index
      %c0_16 = arith.constant 0 : index
      %39 = vector.load %arg5[%c0_13, %c0_14, %c0_15, %c0_16] : memref<1x3x8x128xf32, #tpu.memory_space<vmem>>, vector<1x1x8x128xf32>
      %40 = vector.shape_cast %39 : vector<1x1x8x128xf32> to vector<8x128xf32>
      %41 = vector.shape_cast %38 : vector<8x128xf32> to vector<1x1x8x128xf32>
      tpu.vector_store %arg5[%c0_13, %c0_14, %c0_15, %c0_16], %41 {strides = array<i32>} : memref<1x3x8x128xf32, #tpu.memory_space<vmem>>, vector<1x1x8x128xf32>,
      %c0_17 = arith.constant 0 : index
      %c1 = arith.constant 1 : index
      %c0_18 = arith.constant 0 : index
      %c0_19 = arith.constant 0 : index
      %42 = vector.load %arg5[%c0_17, %c1, %c0_18, %c0_19] : memref<1x3x8x128xf32, #tpu.memory_space<vmem>>, vector<1x1x8x128xf32>
      %43 = vector.shape_cast %42 : vector<1x1x8x128xf32> to vector<8x128xf32>
      %44 = math.absf %32 : vector<16x128xf32>
      %45 = vector.shape_cast %44 : vector<16x128xf32> to vector<2x8x128xf32>
      %cst_20 = arith.constant dense<0.000000e+00> : vector<8x128xf32>
      %46 = vector.multi_reduction <add>, %45, %cst_20 [0] : vector<2x8x128xf32> to vector<8x128xf32>
      %47 = arith.addf %43, %46 : vector<8x128xf32>
      %c0_21 = arith.constant 0 : index
      %c1_22 = arith.constant 1 : index
      %c0_23 = arith.constant 0 : index
      %c0_24 = arith.constant 0 : index
      %48 = vector.load %arg5[%c0_21, %c1_22, %c0_23, %c0_24] : memref<1x3x8x128xf32, #tpu.memory_space<vmem>>, vector<1x1x8x128xf32>
      %49 = vector.shape_cast %48 : vector<1x1x8x128xf32> to vector<8x128xf32>
      %50 = vector.shape_cast %47 : vector<8x128xf32> to vector<1x1x8x128xf32>
      tpu.vector_store %arg5[%c0_21, %c1_22, %c0_23, %c0_24], %50 {strides = array<i32>} : memref<1x3x8x128xf32, #tpu.memory_space<vmem>>, vector<1x1x8x128xf32>,
      %c0_25 = arith.constant 0 : index
      %c2_26 = arith.constant 2 : index
      %c0_27 = arith.constant 0 : index
      %c0_28 = arith.constant 0 : index
      %51 = vector.load %arg5[%c0_25, %c2_26, %c0_27, %c0_28] : memref<1x3x8x128xf32, #tpu.memory_space<vmem>>, vector<1x1x8x128xf32>
      %52 = vector.shape_cast %51 : vector<1x1x8x128xf32> to vector<8x128xf32>
      %53 = arith.extui %29 : vector<16x128xi1> to vector<16x128xi32>
      %54 = arith.sitofp %53 : vector<16x128xi32> to vector<16x128xf32>
      %55 = vector.shape_cast %54 : vector<16x128xf32> to vector<2x8x128xf32>
      %cst_29 = arith.constant dense<0.000000e+00> : vector<8x128xf32>
      %56 = vector.multi_reduction <add>, %55, %cst_29 [0] : vector<2x8x128xf32> to vector<8x128xf32>
      %57 = arith.addf %52, %56 : vector<8x128xf32>
      %c0_30 = arith.constant 0 : index
      %c2_31 = arith.constant 2 : index
      %c0_32 = arith.constant 0 : index
      %c0_33 = arith.constant 0 : index
      %58 = vector.load %arg5[%c0_30, %c2_31, %c0_32, %c0_33] : memref<1x3x8x128xf32, #tpu.memory_space<vmem>>, vector<1x1x8x128xf32>
      %59 = vector.shape_cast %58 : vector<1x1x8x128xf32> to vector<8x128xf32>
      %60 = vector.shape_cast %57 : vector<8x128xf32> to vector<1x1x8x128xf32>
      tpu.vector_store %arg5[%c0_30, %c2_31, %c0_32, %c0_33], %60 {strides = array<i32>} : memref<1x3x8x128xf32, #tpu.memory_space<vmem>>, vector<1x1x8x128xf32>,
      %c1_i32_34 = arith.constant 1 : i32
    } else {
    }
    return
  }
  func.func @transform_0(%arg0: i32, %arg1: i32, %arg2: memref<3xi32, #tpu.memory_space<smem>>) -> (i32, i32) {
    %c1_i32 = arith.constant 1 : i32
    %0 = arith.muli %arg0, %c1_i32 : i32
    %1 = arith.addi %0, %arg1 : i32
    %c1 = arith.constant 1 : index
    %2 = memref.load %arg2[%c1] : memref<3xi32, #tpu.memory_space<smem>>
    %3 = arith.minsi %1, %2 : i32
    %c0_i32 = arith.constant 0 : i32
    %c0_i32_0 = arith.constant 0 : i32
    return %3, %c0_i32 : i32, i32
  }
  func.func @transform_1(%arg0: i32, %arg1: i32, %arg2: memref<3xi32, #tpu.memory_space<smem>>) -> (i32, i32) {
    %c1_i32 = arith.constant 1 : i32
    %0 = arith.muli %arg0, %c1_i32 : i32
    %1 = arith.addi %0, %arg1 : i32
    %c1 = arith.constant 1 : index
    %2 = memref.load %arg2[%c1] : memref<3xi32, #tpu.memory_space<smem>>
    %3 = arith.minsi %1, %2 : i32
    %c0_i32 = arith.constant 0 : i32
    %c0_i32_0 = arith.constant 0 : i32
    return %3, %c0_i32 : i32, i32
  }
  func.func @transform_2(%arg0: i32, %arg1: i32, %arg2: memref<3xi32, #tpu.memory_space<smem>>) -> (i32, i32, i32, i32) {
    %c0_i32 = arith.constant 0 : i32
    %c0_i32_0 = arith.constant 0 : i32
    %c0_i32_1 = arith.constant 0 : i32
    %c0_i32_2 = arith.constant 0 : i32
    return %arg0, %c0_i32, %c0_i32_0, %c0_i32_1 : i32, i32, i32, i32
  }
}

</mosaic_0001>

<bundles_post_ra>
// kernel: masked_both_loss.1
= control target key start
LH: loop header
LB: loop body
LE: loop exit
PB: predicated region body
PF: predicated region fallthrough
CT: control target
= control target key end

     0   :  { %s344_s0 = inlined_call_operand.vmem [shape: s32[3], index: 0, kind: input, shape index: {}]   ;;  %s345_s1 = inlined_call_operand.vmem [shape: f32[16,128], index: 1, kind: input, shape index: {}]   ;;  %s346_s2 = inlined_call_operand.vmem [shape: f32[16,128], index: 2, kind: input, shape index: {}]   ;;  %s347_s3 = inlined_call_operand.vmem [shape: f32[1,3,8,128], index: 3, kind: output, shape index: {}]  }
   0x1   :  { %s8_s14 = sshll.u32 %s344_s0, 4  ;;  %s9_s14 = int_to_ptr.vmem [resolvable:$true] %s8_s14 }
   0x2   :  { %s236_s15 = scalar_lea.vmem %s9_s14, 16  ;;  %p241_p1 = scmp.lt.s32.totalorder %s9_s14, %s9_s14 }
   0x3   :  { %p237_p0 = scmp.ne.s32.totalorder %s9_s14, %s236_s15  ;;  %p242_p2 = scmp.lt.s32.totalorder %s236_s15, %s236_s15 }
   0x5   :  { %p243_p3 = por %p242_p2, %p241_p1 }
   0x7   :  { %p244_p4 = pnand %p243_p3, %p237_p0 }
   0x9   :  { %247 = shalt.err (!%p244_p4)  }
   0xa   :  { %s250_s16 = smov [#allocation3]  }
   0xb   :  { %11 = dma.vmem_to_smem %s9_s14, 16, %s250_s16, [#allocation2] }
   0xc   :  { %248 = dma.done.wait [#allocation2], 16 }
   0xd   :  { %249 = vsyncadd [#allocation2], 4294967280 }
   0xe   :  { %13 = sfence }
   0xf   :  { %s207_s17 = sld [smem:[#allocation3 + $0x1]]  ;;  %s277_s18 = sld [smem:[#allocation3 + $0x2]]  ;;  %v251_v0 = vmov 0.0  }
  0x10   :  { %96 = vst [vmem:[%s347_s3] sm:$0xff] %v251_v0  ;;  %97 = vst [vmem:[%s347_s3 + $0x8] sm:$0xff] %v251_v0 }
  0x11   :  { %98 = vst [vmem:[%s347_s3 + $0x10] sm:$0xff] %v251_v0 }
  0x15   :  { %p208_p5 = scmp.gt.s32.totalorder %s207_s17, 0  ;;  %p217_p7 = scmp.le.s32.totalorder %s277_s18, 0 }
  0x16   :  { %v252_v8 = vmov (!%p217_p7), 0.0  }
  0x17   :  { %s349_s17 = smov (%p208_p5, %s207_s17), 0  ;;  %104 = sbr.rel (%p217_p7) target bundleno = 42 (0x2a), region = 17 }
  0x18   :  { %s209_s24 = sshll.u32 %s349_s17, 1  ;;  %v220_v7 = vld [vmem:[%s347_s3 + $0x10] sm:$0xff] (!%p217_p7)  ;;  %v115_v19 = vld [vmem:[%s347_s3] sm:$0xff] (!%p217_p7)  ;;  %v218_v20 = vld [vmem:[%s347_s3 + $0x8] sm:$0xff] (!%p217_p7) }
  0x19   :  { %p69_p6 = scmp.lt.s32.totalorder %s209_s24, 1 }
  0x1b   :  { %s351_s24 = smov (!%p69_p6, %s209_s24), 1 }
  0x1c   :  { %s210_s25 = sshll.u32 %s351_s24, 3 }
  0x1d   :  { %s291_s28 = scalar_lea.vmem %s345_s1, %s210_s25  ;;  %s296_s4 = scalar_lea.vmem %s346_s2, %s210_s25 }
  0x1e   :  { %v105_v1 = vld [vmem:[%s296_s4] sm:$0xff]  ;;  %v106_v2 = vld [vmem:[%s296_s4 + $0x8] sm:$0xff] }
  0x1f   :  { %v107_v3 = vld [vmem:[%s291_s28] sm:$0xff]  ;;  %v108_v4 = vld [vmem:[%s291_s28 + $0x8] sm:$0xff]  ;;  %vm109_vm0 = vcmp.gt.f32.partialorder %v105_v1, 0.0  ;;  %vm110_vm1 = vcmp.gt.f32.partialorder %v106_v2, 0.0 }
  0x20   :  { %v111_v5 = vsub.f32 %v105_v1, %v107_v3  ;;  %v112_v6 = vsub.f32 %v106_v2, %v108_v4  ;;  %v221_v9 = vsel %vm109_vm0, 1.0, %v252_v8  ;;  %v222_v10 = vsel %vm110_vm1, 1.0, %v252_v8 }
  0x21   :  { %v134_v12 = vadd.f32 %v222_v10, %v221_v9 }
  0x22   :  { %v113_v11 = vsel %vm109_vm0, %v111_v5, 0.0  ;;  %v114_v13 = vsel %vm110_vm1, %v112_v6, 0.0 }
  0x23   :  { %v116_v14 = vmul.f32 %v113_v11, %v113_v11  ;;  %v123_v15 = vand.u32 2147483647, %v113_v11  ;;  %v117_v16 = vmul.f32 %v114_v13, %v114_v13  ;;  %v124_v17 = vand.u32 2147483647, %v114_v13 }
  0x24   :  { %v135_v18 = vadd.f32 %v220_v7, %v134_v12 }
  0x25   :  { %v118_v21 = vadd.f32 %v117_v16, %v116_v14  ;;  %v125_v22 = vadd.f32 %v124_v17, %v123_v15 }
  0x26   :  { %223 = vst [vmem:[%s347_s3 + $0x10] sm:$0xff] %v135_v18 }
  0x27   :  { %v119_v23 = vadd.f32 %v118_v21, %v115_v19  ;;  %v126_v24 = vadd.f32 %v218_v20, %v125_v22 }
  0x29   :  { %120 = vst [vmem:[%s347_s3] sm:$0xff] %v119_v23  ;;  %219 = vst [vmem:[%s347_s3 + $0x8] sm:$0xff] %v126_v24 }
  0x2a PF:  { %p225_p8 = scmp.gt.s32.totalorder %s277_s18, 0 }
  0x2b   :  { %s141_s15 = sld [smem:[#allocation3]] (!%p225_p8)  ;;  %v150_v25 = vlaneseq (!%p225_p8)  ;;  %v143_v26 = vld [vmem:[%s296_s4] sm:$0xff] (!%p225_p8)  ;;  %v144_v29 = vld [vmem:[%s296_s4 + $0x8] sm:$0xff] (!%p225_p8)  ;;  %v253_v36 = vmov (!%p225_p8), 0.0  }
  0x2c   :  { %140 = sbr.rel (%p225_p8) target bundleno = 61 (0x3d), region = 21  ;;  %v145_v27 = vld [vmem:[%s291_s28] sm:$0xff] (!%p225_p8)  ;;  %v146_v30 = vld [vmem:[%s291_s28 + $0x8] sm:$0xff] (!%p225_p8)  ;;  %vm147_vm2 = vcmp.gt.f32.partialorder (!%p225_p8), %v143_v26, 0.0  ;;  %vm148_vm3 = vcmp.gt.f32.partialorder (!%p225_p8), %v144_v29, 0.0 }
  0x2d   :  { %v151_v28 = vshrl.u32 (!%p225_p8), %v150_v25, 7  ;;  %v165_v32 = vsub.f32 (!%p225_p8), %v143_v26, %v145_v27  ;;  %v166_v34 = vsub.f32 (!%p225_p8), %v144_v29, %v146_v30  ;;  %v228_v41 = vld [vmem:[%s347_s3 + $0x10] sm:$0xff] (!%p225_p8) }
  0x2f   :  { %v152_v31 = vadd.s32 (!%p225_p8), 8, %v151_v28 }
  0x30   :  { %v169_v46 = vld [vmem:[%s347_s3] sm:$0xff] (!%p225_p8)  ;;  %v226_v47 = vld [vmem:[%s347_s3 + $0x8] sm:$0xff] (!%p225_p8) }
  0x31   :  { %v156_v33 = vstv (!%p225_p8), %s141_s15 }
  0x32   :  { %vm157_vm4 = vcmp.lt.s32.totalorder (!%p225_p8), %v151_v28, %v156_v33  ;;  %vm158_vm5 = vcmp.lt.s32.totalorder (!%p225_p8), %v152_v31, %v156_v33 }
  0x33   :  { %vm163_vm6 = vmand %vm147_vm2, %vm157_vm4 }
  0x34   :  { %vm164_vm7 = vmand %vm148_vm3, %vm158_vm5  ;;  %v167_v35 = vsel %vm163_vm6, %v165_v32, 0.0  ;;  %v229_v37 = vsel %vm163_vm6, 1.0, %v253_v36 }
  0x35   :  { %v168_v38 = vsel %vm164_vm7, %v166_v34, 0.0  ;;  %v170_v39 = vmul.f32 %v167_v35, %v167_v35  ;;  %v177_v40 = vand.u32 2147483647, %v167_v35  ;;  %v230_v42 = vsel %vm164_vm7, 1.0, %v253_v36 }
  0x36   :  { %v171_v43 = vmul.f32 %v168_v38, %v168_v38  ;;  %v178_v44 = vand.u32 2147483647, %v168_v38  ;;  %v188_v45 = vadd.f32 %v230_v42, %v229_v37 }
  0x38   :  { %v172_v48 = vadd.f32 %v171_v43, %v170_v39  ;;  %v179_v49 = vadd.f32 %v178_v44, %v177_v40  ;;  %v189_v50 = vadd.f32 %v228_v41, %v188_v45 }
  0x3a   :  { %v173_v51 = vadd.f32 %v172_v48, %v169_v46  ;;  %v180_v52 = vadd.f32 %v226_v47, %v179_v49  ;;  %231 = vst [vmem:[%s347_s3 + $0x10] sm:$0xff] %v189_v50 }
  0x3c   :  { %174 = vst [vmem:[%s347_s3] sm:$0xff] %v173_v51  ;;  %227 = vst [vmem:[%s347_s3 + $0x8] sm:$0xff] %v180_v52 }
  0x3d PF:  {}

</bundles_post_ra>
